<compile_context>
chip_gen: v7x
topology: tpu7x:2x2x1
jax: 0.10.0
libtpu: 0.0.40
codegen_flags: <defaults>
</compile_context>

<pallas_src>
import functools

import numpy as np
import jax
import jax.numpy as jnp
from jax import lax
from jax.experimental import pallas as pl
from jax.experimental.pallas import tpu as pltpu


def _round_up(v, m):
    return (v + m - 1) // m * m


def _default_batch_tile():
    # Smaller batch tile on low-VMEM generations (v7x: 64 MiB per TensorCore).
    try:
        vmem_bytes = pltpu.get_tpu_info().vmem_capacity_bytes
    except Exception:
        return 256
    return 256 if vmem_bytes >= (96 << 20) else 128


def _prv_kernel(x_ref, wnum_ref, wden_ref, srr_ref, sdiff_ref, rrmask_ref,
                cos_ref, sin_ref, lf_ref, hf_ref,
                w1_ref, b1_ref, w2_ref, b2_ref, gamma_ref, beta_ref,
                o_ref, *, inv_temp, rr_offset, n_rr):
    f32 = jnp.float32
    x = x_ref[...]                                               # (TB, S)

    # ---- sliding-window soft-argmax as two MXU matmuls ----------------------
    # Softmax ratio is invariant to a per-row constant shift; subtracting the
    # global row max keeps every exp argument <= 0 (no overflow).
    xm = jnp.max(x, axis=1, keepdims=True)
    e = jnp.exp((x - xm) * inv_temp)                             # (TB, S), EUP
    num = jnp.dot(e, wnum_ref[...], preferred_element_type=f32)  # (TB, NWp)
    den = jnp.dot(e, wden_ref[...], preferred_element_type=f32)
    p_loc = num / jnp.maximum(den, 1e-30)                        # local peak offsets in [0, ws)

    # ---- RR intervals (sec) & successive diffs via constant difference mats -
    rr_mask = rrmask_ref[...]                                    # (1, NWp), 1 on valid RR lanes
    rr = jnp.dot(p_loc, srr_ref[...], preferred_element_type=f32) + rr_mask * rr_offset
    diff = jnp.dot(p_loc, sdiff_ref[...], preferred_element_type=f32)

    inv_n = 1.0 / n_rr
    inv_nm1 = 1.0 / (n_rr - 1)
    mean_rr = jnp.sum(rr, axis=1, keepdims=True) * inv_n         # (TB, 1)
    rmssd = jnp.sqrt(jnp.sum(diff * diff, axis=1, keepdims=True) * inv_nm1 + 1e-6)
    dev = (rr - mean_rr) * rr_mask
    sdnn = jnp.sqrt(jnp.sum(dev * dev, axis=1, keepdims=True) * inv_nm1)

    # ---- frequency features: zero-padded rFFT as an explicit DFT matmul -----
    re = jnp.dot(rr, cos_ref[...], preferred_element_type=f32)   # (TB, NFp)
    im = jnp.dot(rr, sin_ref[...], preferred_element_type=f32)
    power = re * re + im * im
    lf_p = jnp.sum(power * lf_ref[...], axis=1, keepdims=True)
    hf_p = jnp.sum(power * hf_ref[...], axis=1, keepdims=True)

    # ---- pack 5 features into a lane block and run the FC head --------------
    col = lax.broadcasted_iota(jnp.int32, (1, 8), 1)
    feats = (mean_rr * (col == 0).astype(f32)
             + rmssd * (col == 1).astype(f32)
             + sdnn * (col == 2).astype(f32)
             + lf_p * (col == 3).astype(f32)
             + hf_p * (col == 4).astype(f32))                    # (TB, 8)

    h = jnp.maximum(
        jnp.dot(feats, w1_ref[...], preferred_element_type=f32) + b1_ref[...], 0.0)
    y = jnp.dot(h, w2_ref[...], preferred_element_type=f32) + b2_ref[...]

    mu = jnp.mean(y, axis=1, keepdims=True)
    var = jnp.mean((y - mu) ** 2, axis=1, keepdims=True)
    o_ref[...] = (y - mu) * lax.rsqrt(var + 1e-5) * gamma_ref[...] + beta_ref[...]


def init_params(key, embedding_dim=128):
    hdim = embedding_dim // 2
    k1, k2, k3, k4 = jax.random.split(key, 4)
    lim1 = 1.0 / np.sqrt(5.0)
    lim2 = 1.0 / np.sqrt(hdim)
    w1 = jax.random.uniform(k1, (5, hdim), jnp.float32, -lim1, lim1)
    b1 = jax.random.uniform(k2, (1, hdim), jnp.float32, -lim1, lim1)
    w2 = jax.random.uniform(k3, (hdim, embedding_dim), jnp.float32, -lim2, lim2)
    b2 = jax.random.uniform(k4, (1, embedding_dim), jnp.float32, -lim2, lim2)
    gamma = jnp.ones((1, embedding_dim), jnp.float32)
    beta = jnp.zeros((1, embedding_dim), jnp.float32)
    return (w1, b1, w2, b2, gamma, beta)


def prv_branch_forward(x, params, *, embedding_dim=128, window_size=30, stride=15,
                       temperature=0.1, fs=30.0, batch_tile=None, vmem_limit_bytes=None):
    B, S = x.shape
    ws, st = window_size, stride
    num_windows = (S - ws) // st + 1
    n = num_windows - 1
    assert n >= 2, "need at least 3 windows for RMSSD / FFT path"
    n_fft = 2 ** int(np.ceil(np.log2(n)))
    n_freqs = n_fft // 2 + 1

    NWp = _round_up(num_windows, 128)   # lane-dense window / RR width
    NFp = _round_up(n_freqs, 128)       # lane-dense DFT width

    # --- soft-argmax constants: peak_local = (E @ W_num) / (E @ W_den) -------
    wnum = np.zeros((S, NWp), np.float32)
    wden = np.zeros((S, NWp), np.float32)
    for i in range(num_windows):
        s0 = i * st
        wden[s0:s0 + ws, i] = 1.0
        wnum[s0:s0 + ws, i] = np.arange(ws, dtype=np.float32)   # local indices
    wden[:, num_windows:] = 1.0          # padded columns: denom >= 1 -> peak 0, no NaN

    # --- constant difference matrices on local peaks -------------------------
    # rr[:, i]   = (p[i+1] - p[i]) / fs + stride/fs        (i < n)
    # diff[:, i] = rr[:, i+1] - rr[:, i] = (p[i] - 2 p[i+1] + p[i+2]) / fs  (i < n-1)
    srr = np.zeros((NWp, NWp), np.float32)
    for i in range(n):
        srr[i, i] = -1.0 / fs
        srr[i + 1, i] = 1.0 / fs
    sdiff = np.zeros((NWp, NWp), np.float32)
    for i in range(n - 1):
        sdiff[i, i] = 1.0 / fs
        sdiff[i + 1, i] = -2.0 / fs
        sdiff[i + 2, i] = 1.0 / fs
    rr_mask = np.zeros((1, NWp), np.float32)
    rr_mask[0, :n] = 1.0

    # --- zero-padded rFFT as explicit DFT, LF/HF band masks -------------------
    t = np.arange(n, dtype=np.float64)[:, None]
    k = np.arange(n_freqs, dtype=np.float64)[None, :]
    ang = 2.0 * np.pi * t * k / n_fft
    cos_m = np.zeros((NWp, NFp), np.float32)
    sin_m = np.zeros((NWp, NFp), np.float32)
    cos_m[:n, :n_freqs] = np.cos(ang)
    sin_m[:n, :n_freqs] = -np.sin(ang)
    freqs = np.arange(n_freqs) * fs / n_fft
    lf = np.zeros((1, NFp), np.float32)
    hf = np.zeros((1, NFp), np.float32)
    lf[0, :n_freqs] = ((freqs >= 0.04) & (freqs < 0.15)).astype(np.float32)
    hf[0, :n_freqs] = ((freqs >= 0.15) & (freqs <= 0.4)).astype(np.float32)

    w1, b1, w2, b2, gamma, beta = params
    hdim = w1.shape[1]
    w1p = jnp.concatenate([w1, jnp.zeros((3, hdim), jnp.float32)], axis=0)   # (8, H)

    # --- batch tiling ---------------------------------------------------------
    if batch_tile is None:
        batch_tile = _default_batch_tile()
    if B <= batch_tile:
        TB = B                                   # full-dim block is always legal
    else:
        TB = _round_up(min(batch_tile, B), 8)    # tiled block: multiple of 8 sublanes
    grid = (pl.cdiv(B, TB),)

    consts = (jnp.asarray(wnum), jnp.asarray(wden), jnp.asarray(srr),
              jnp.asarray(sdiff), jnp.asarray(rr_mask), jnp.asarray(cos_m),
              jnp.asarray(sin_m), jnp.asarray(lf), jnp.asarray(hf),
              w1p, b1, w2, b2, gamma, beta)

    kernel = functools.partial(_prv_kernel, inv_temp=1.0 / temperature,
                               rr_offset=float(st) / fs, n_rr=n)

    x_spec = pl.BlockSpec((TB, S), lambda b: (b, 0))
    const_specs = [pl.BlockSpec(c.shape, lambda b: (0, 0)) for c in consts]
    out_spec = pl.BlockSpec((TB, embedding_dim), lambda b: (b, 0))

    cp_kwargs = dict(dimension_semantics=("parallel",))
    if vmem_limit_bytes is not None:
        cp_kwargs["vmem_limit_bytes"] = vmem_limit_bytes

    return pl.pallas_call(
        kernel,
        out_shape=jax.ShapeDtypeStruct((B, embedding_dim), jnp.float32),
        grid=grid,
        in_specs=[x_spec] + const_specs,
        out_specs=out_spec,
        compiler_params=pltpu.CompilerParams(**cp_kwargs),
    )(x, *consts)


def prv_branch_reference(x, params, *, window_size=30, stride=15, temperature=0.1, fs=30.0):
    """Pure-JAX mirror of the PyTorch forward pass (for a correctness check)."""
    w1, b1, w2, b2, gamma, beta = params
    B, S = x.shape
    ws, st = window_size, stride
    num_windows = (S - ws) // st + 1
    idx = jnp.arange(ws, dtype=x.dtype)
    cols = []
    for i in range(num_windows):
        start = i * st
        win = x[:, start:start + ws]
        sm = jax.nn.softmax(win / temperature, axis=1)
        cols.append(jnp.sum(sm * idx, axis=1) + start)
    peaks = jnp.stack(cols, axis=1)
    rr = (peaks[:, 1:] - peaks[:, :-1]) / fs
    mean_rr = rr.mean(axis=1, keepdims=True)
    d = rr[:, 1:] - rr[:, :-1]
    rmssd = jnp.sqrt((d ** 2).mean(axis=1, keepdims=True) + 1e-6)
    sdnn = jnp.std(rr, axis=1, ddof=1, keepdims=True)
    n = rr.shape[1]
    n_fft = 2 ** int(np.ceil(np.log2(n)))
    fft = jnp.fft.rfft(rr, n=n_fft, axis=1)
    power = jnp.abs(fft) ** 2
    freqs = np.fft.rfftfreq(n_fft, d=1.0 / fs)
    lf = jnp.asarray(((freqs >= 0.04) & (freqs < 0.15)).astype(np.float32))[None, :]
    hf = jnp.asarray(((freqs >= 0.15) & (freqs <= 0.4)).astype(np.float32))[None, :]
    lf_p = jnp.sum(power * lf, axis=1, keepdims=True)
    hf_p = jnp.sum(power * hf, axis=1, keepdims=True)
    feats = jnp.concatenate([mean_rr, rmssd, sdnn, lf_p, hf_p], axis=1)
    h = jax.nn.relu(feats @ w1 + b1)
    y = h @ w2 + b2
    mu = y.mean(axis=1, keepdims=True)
    var = ((y - mu) ** 2).mean(axis=1, keepdims=True)
    return (y - mu) / jnp.sqrt(var + 1e-5) * gamma + beta


if __name__ == "__main__":
    key = jax.random.PRNGKey(0)
    kx, kp = jax.random.split(key)
    B, S = 2, 128                      # -> 7 windows, 6 RR intervals, n_fft = 8
    EMB = 128
    x = jax.random.normal(kx, (B, S), dtype=jnp.float32)
    params = init_params(kp, embedding_dim=EMB)

    out = jax.block_until_ready(prv_branch_forward(x, params, embedding_dim=EMB))
    ref = jax.block_until_ready(prv_branch_reference(x, params))
    np.testing.assert_allclose(np.asarray(out), np.asarray(ref), rtol=2e-2, atol=2e-2)

    print("KERNEL_OK")
</pallas_src>

<mosaic_0001>
module attributes {stable_mosaic.version = 11 : i64} {
  func.func @_prv_kernel(%arg0: i32, %arg1: memref<2x128xf32, #tpu.memory_space<vmem>>, %arg2: memref<128x128xf32, #tpu.memory_space<vmem>>, %arg3: memref<128x128xf32, #tpu.memory_space<vmem>>, %arg4: memref<128x128xf32, #tpu.memory_space<vmem>>, %arg5: memref<128x128xf32, #tpu.memory_space<vmem>>, %arg6: memref<1x128xf32, #tpu.memory_space<vmem>>, %arg7: memref<128x128xf32, #tpu.memory_space<vmem>>, %arg8: memref<128x128xf32, #tpu.memory_space<vmem>>, %arg9: memref<1x128xf32, #tpu.memory_space<vmem>>, %arg10: memref<1x128xf32, #tpu.memory_space<vmem>>, %arg11: memref<8x64xf32, #tpu.memory_space<vmem>>, %arg12: memref<1x64xf32, #tpu.memory_space<vmem>>, %arg13: memref<64x128xf32, #tpu.memory_space<vmem>>, %arg14: memref<1x128xf32, #tpu.memory_space<vmem>>, %arg15: memref<1x128xf32, #tpu.memory_space<vmem>>, %arg16: memref<1x128xf32, #tpu.memory_space<vmem>>, %arg17: memref<2x128xf32, #tpu.memory_space<vmem>>) attributes {dimension_semantics = [#tpu.dimension_semantics<parallel>], iteration_bounds = array<i64: 1>, scalar_prefetch = 0 : i64, scratch_operands = 0 : i64, tpu.core_type = #tpu.core_type<tc>, window_params = [{transform_indices = @transform_0, window_bounds = array<i64: 2, 128>}, {pipeline_mode = #tpu.pipeline_mode<synchronous>, transform_indices = @transform_1, window_bounds = array<i64: 128, 128>}, {pipeline_mode = #tpu.pipeline_mode<synchronous>, transform_indices = @transform_2, window_bounds = array<i64: 128, 128>}, {pipeline_mode = #tpu.pipeline_mode<synchronous>, transform_indices = @transform_3, window_bounds = array<i64: 128, 128>}, {pipeline_mode = #tpu.pipeline_mode<synchronous>, transform_indices = @transform_4, window_bounds = array<i64: 128, 128>}, {pipeline_mode = #tpu.pipeline_mode<synchronous>, transform_indices = @transform_5, window_bounds = array<i64: 1, 128>}, {pipeline_mode = #tpu.pipeline_mode<synchronous>, transform_indices = @transform_6, window_bounds = array<i64: 128, 128>}, {pipeline_mode = #tpu.pipeline_mode<synchronous>, transform_indices = @transform_7, window_bounds = array<i64: 128, 128>}, {pipeline_mode = #tpu.pipeline_mode<synchronous>, transform_indices = @transform_8, window_bounds = array<i64: 1, 128>}, {pipeline_mode = #tpu.pipeline_mode<synchronous>, transform_indices = @transform_9, window_bounds = array<i64: 1, 128>}, {pipeline_mode = #tpu.pipeline_mode<synchronous>, transform_indices = @transform_10, window_bounds = array<i64: 8, 64>}, {pipeline_mode = #tpu.pipeline_mode<synchronous>, transform_indices = @transform_11, window_bounds = array<i64: 1, 64>}, {pipeline_mode = #tpu.pipeline_mode<synchronous>, transform_indices = @transform_12, window_bounds = array<i64: 64, 128>}, {pipeline_mode = #tpu.pipeline_mode<synchronous>, transform_indices = @transform_13, window_bounds = array<i64: 1, 128>}, {pipeline_mode = #tpu.pipeline_mode<synchronous>, transform_indices = @transform_14, window_bounds = array<i64: 1, 128>}, {pipeline_mode = #tpu.pipeline_mode<synchronous>, transform_indices = @transform_15, window_bounds = array<i64: 1, 128>}, {transform_indices = @transform_16, window_bounds = array<i64: 2, 128>}]} {
    %c0 = arith.constant 0 : index
    %c0_0 = arith.constant 0 : index
    %0 = vector.load %arg1[%c0, %c0_0] : memref<2x128xf32, #tpu.memory_space<vmem>>, vector<2x128xf32>
    %cst = arith.constant dense<0xFF800000> : vector<2xf32>
    %1 = vector.multi_reduction <maximumf>, %0, %cst [1] : vector<2x128xf32> to vector<2xf32>
    %2 = vector.shape_cast %1 : vector<2xf32> to vector<2x1xf32>
    %3 = vector.broadcast %2 : vector<2x1xf32> to vector<2x128xf32>
    %4 = arith.subf %0, %3 : vector<2x128xf32>
    %cst_1 = arith.constant 1.000000e+01 : f32
    %5 = vector.broadcast %cst_1 : f32 to vector<2x128xf32>
    %6 = arith.mulf %4, %5 : vector<2x128xf32>
    %7 = math.exp %6 : vector<2x128xf32>
    %c0_2 = arith.constant 0 : index
    %c0_3 = arith.constant 0 : index
    %8 = vector.load %arg2[%c0_2, %c0_3] : memref<128x128xf32, #tpu.memory_space<vmem>>, vector<128x128xf32>
    %cst_4 = arith.constant dense<0.000000e+00> : vector<2x128xf32>
    %9 = tpu.matmul %7, %8, %cst_4 {dimension_numbers = #tpu.dot_dimension_numbers<[1], [0], [0], [1], [0, 0, 1, 1], [], []>} : vector<2x128xf32>, vector<128x128xf32>, vector<2x128xf32> -> vector<2x128xf32>
    %c0_5 = arith.constant 0 : index
    %c0_6 = arith.constant 0 : index
    %10 = vector.load %arg3[%c0_5, %c0_6] : memref<128x128xf32, #tpu.memory_space<vmem>>, vector<128x128xf32>
    %cst_7 = arith.constant dense<0.000000e+00> : vector<2x128xf32>
    %11 = tpu.matmul %7, %10, %cst_7 {dimension_numbers = #tpu.dot_dimension_numbers<[1], [0], [0], [1], [0, 0, 1, 1], [], []>} : vector<2x128xf32>, vector<128x128xf32>, vector<2x128xf32> -> vector<2x128xf32>
    %cst_8 = arith.constant 1.000000e-30 : f32
    %12 = vector.broadcast %cst_8 : f32 to vector<2x128xf32>
    %13 = arith.maximumf %11, %12 : vector<2x128xf32>
    %14 = arith.divf %9, %13 : vector<2x128xf32>
    %c0_9 = arith.constant 0 : index
    %c0_10 = arith.constant 0 : index
    %15 = vector.load %arg6[%c0_9, %c0_10] : memref<1x128xf32, #tpu.memory_space<vmem>>, vector<1x128xf32>
    %c0_11 = arith.constant 0 : index
    %c0_12 = arith.constant 0 : index
    %16 = vector.load %arg4[%c0_11, %c0_12] : memref<128x128xf32, #tpu.memory_space<vmem>>, vector<128x128xf32>
    %cst_13 = arith.constant dense<0.000000e+00> : vector<2x128xf32>
    %17 = tpu.matmul %14, %16, %cst_13 {dimension_numbers = #tpu.dot_dimension_numbers<[1], [0], [0], [1], [0, 0, 1, 1], [], []>} : vector<2x128xf32>, vector<128x128xf32>, vector<2x128xf32> -> vector<2x128xf32>
    %cst_14 = arith.constant 5.000000e-01 : f32
    %18 = vector.broadcast %cst_14 : f32 to vector<1x128xf32>
    %19 = arith.mulf %15, %18 : vector<1x128xf32>
    %20 = vector.broadcast %19 : vector<1x128xf32> to vector<2x128xf32>
    %21 = arith.addf %17, %20 : vector<2x128xf32>
    %c0_15 = arith.constant 0 : index
    %c0_16 = arith.constant 0 : index
    %22 = vector.load %arg5[%c0_15, %c0_16] : memref<128x128xf32, #tpu.memory_space<vmem>>, vector<128x128xf32>
    %cst_17 = arith.constant dense<0.000000e+00> : vector<2x128xf32>
    %23 = tpu.matmul %14, %22, %cst_17 {dimension_numbers = #tpu.dot_dimension_numbers<[1], [0], [0], [1], [0, 0, 1, 1], [], []>} : vector<2x128xf32>, vector<128x128xf32>, vector<2x128xf32> -> vector<2x128xf32>
    %cst_18 = arith.constant dense<0.000000e+00> : vector<2xf32>
    %24 = vector.multi_reduction <add>, %21, %cst_18 [1] : vector<2x128xf32> to vector<2xf32>
    %25 = vector.shape_cast %24 : vector<2xf32> to vector<2x1xf32>
    %cst_19 = arith.constant 0.166666672 : f32
    %26 = vector.broadcast %cst_19 : f32 to vector<2x1xf32>
    %27 = arith.mulf %25, %26 : vector<2x1xf32>
    %28 = arith.mulf %23, %23 : vector<2x128xf32>
    %cst_20 = arith.constant dense<0.000000e+00> : vector<2xf32>
    %29 = vector.multi_reduction <add>, %28, %cst_20 [1] : vector<2x128xf32> to vector<2xf32>
    %30 = vector.shape_cast %29 : vector<2xf32> to vector<2x1xf32>
    %cst_21 = arith.constant 2.000000e-01 : f32
    %31 = vector.broadcast %cst_21 : f32 to vector<2x1xf32>
    %32 = arith.mulf %30, %31 : vector<2x1xf32>
    %cst_22 = arith.constant 9.99999997E-7 : f32
    %33 = vector.broadcast %cst_22 : f32 to vector<2x1xf32>
    %34 = arith.addf %32, %33 : vector<2x1xf32>
    %35 = math.sqrt %34 : vector<2x1xf32>
    %36 = vector.broadcast %27 : vector<2x1xf32> to vector<2x128xf32>
    %37 = arith.subf %21, %36 : vector<2x128xf32>
    %38 = vector.broadcast %15 : vector<1x128xf32> to vector<2x128xf32>
    %39 = arith.mulf %37, %38 : vector<2x128xf32>
    %40 = arith.mulf %39, %39 : vector<2x128xf32>
    %cst_23 = arith.constant dense<0.000000e+00> : vector<2xf32>
    %41 = vector.multi_reduction <add>, %40, %cst_23 [1] : vector<2x128xf32> to vector<2xf32>
    %42 = vector.shape_cast %41 : vector<2xf32> to vector<2x1xf32>
    %cst_24 = arith.constant 2.000000e-01 : f32
    %43 = vector.broadcast %cst_24 : f32 to vector<2x1xf32>
    %44 = arith.mulf %42, %43 : vector<2x1xf32>
    %45 = math.sqrt %44 : vector<2x1xf32>
    %c0_25 = arith.constant 0 : index
    %c0_26 = arith.constant 0 : index
    %46 = vector.load %arg7[%c0_25, %c0_26] : memref<128x128xf32, #tpu.memory_space<vmem>>, vector<128x128xf32>
    %cst_27 = arith.constant dense<0.000000e+00> : vector<2x128xf32>
    %47 = tpu.matmul %21, %46, %cst_27 {dimension_numbers = #tpu.dot_dimension_numbers<[1], [0], [0], [1], [0, 0, 1, 1], [], []>} : vector<2x128xf32>, vector<128x128xf32>, vector<2x128xf32> -> vector<2x128xf32>
    %c0_28 = arith.constant 0 : index
    %c0_29 = arith.constant 0 : index
    %48 = vector.load %arg8[%c0_28, %c0_29] : memref<128x128xf32, #tpu.memory_space<vmem>>, vector<128x128xf32>
    %cst_30 = arith.constant dense<0.000000e+00> : vector<2x128xf32>
    %49 = tpu.matmul %21, %48, %cst_30 {dimension_numbers = #tpu.dot_dimension_numbers<[1], [0], [0], [1], [0, 0, 1, 1], [], []>} : vector<2x128xf32>, vector<128x128xf32>, vector<2x128xf32> -> vector<2x128xf32>
    %50 = arith.mulf %47, %47 : vector<2x128xf32>
    %51 = arith.mulf %49, %49 : vector<2x128xf32>
    %52 = arith.addf %50, %51 : vector<2x128xf32>
    %c0_31 = arith.constant 0 : index
    %c0_32 = arith.constant 0 : index
    %53 = vector.load %arg9[%c0_31, %c0_32] : memref<1x128xf32, #tpu.memory_space<vmem>>, vector<1x128xf32>
    %54 = vector.broadcast %53 : vector<1x128xf32> to vector<2x128xf32>
    %55 = arith.mulf %52, %54 : vector<2x128xf32>
    %cst_33 = arith.constant dense<0.000000e+00> : vector<2xf32>
    %56 = vector.multi_reduction <add>, %55, %cst_33 [1] : vector<2x128xf32> to vector<2xf32>
    %57 = vector.shape_cast %56 : vector<2xf32> to vector<2x1xf32>
    %c0_34 = arith.constant 0 : index
    %c0_35 = arith.constant 0 : index
    %58 = vector.load %arg10[%c0_34, %c0_35] : memref<1x128xf32, #tpu.memory_space<vmem>>, vector<1x128xf32>
    %59 = vector.broadcast %58 : vector<1x128xf32> to vector<2x128xf32>
    %60 = arith.mulf %52, %59 : vector<2x128xf32>
    %cst_36 = arith.constant dense<0.000000e+00> : vector<2xf32>
    %61 = vector.multi_reduction <add>, %60, %cst_36 [1] : vector<2x128xf32> to vector<2xf32>
    %62 = vector.shape_cast %61 : vector<2xf32> to vector<2x1xf32>
    %63 = tpu.iota {dimensions = array<i32: 1>} : vector<1x8xi32>
    %c0_i32 = arith.constant 0 : i32
    %64 = vector.broadcast %c0_i32 : i32 to vector<1x8xi32>
    %65 = arith.cmpi eq, %63, %64 : vector<1x8xi32>
    %66 = arith.extui %65 : vector<1x8xi1> to vector<1x8xi32>
    %67 = arith.sitofp %66 : vector<1x8xi32> to vector<1x8xf32>
    %68 = vector.broadcast %27 : vector<2x1xf32> to vector<2x8xf32>
    %69 = vector.broadcast %67 : vector<1x8xf32> to vector<2x8xf32>
    %70 = arith.mulf %68, %69 : vector<2x8xf32>
    %c1_i32 = arith.constant 1 : i32
    %71 = vector.broadcast %c1_i32 : i32 to vector<1x8xi32>
    %72 = arith.cmpi eq, %63, %71 : vector<1x8xi32>
    %73 = arith.extui %72 : vector<1x8xi1> to vector<1x8xi32>
    %74 = arith.sitofp %73 : vector<1x8xi32> to vector<1x8xf32>
    %75 = vector.broadcast %35 : vector<2x1xf32> to vector<2x8xf32>
    %76 = vector.broadcast %74 : vector<1x8xf32> to vector<2x8xf32>
    %77 = arith.mulf %75, %76 : vector<2x8xf32>
    %78 = arith.addf %70, %77 : vector<2x8xf32>
    %c2_i32 = arith.constant 2 : i32
    %79 = vector.broadcast %c2_i32 : i32 to vector<1x8xi32>
    %80 = arith.cmpi eq, %63, %79 : vector<1x8xi32>
    %81 = arith.extui %80 : vector<1x8xi1> to vector<1x8xi32>
    %82 = arith.sitofp %81 : vector<1x8xi32> to vector<1x8xf32>
    %83 = vector.broadcast %45 : vector<2x1xf32> to vector<2x8xf32>
    %84 = vector.broadcast %82 : vector<1x8xf32> to vector<2x8xf32>
    %85 = arith.mulf %83, %84 : vector<2x8xf32>
    %86 = arith.addf %78, %85 : vector<2x8xf32>
    %c3_i32 = arith.constant 3 : i32
    %87 = vector.broadcast %c3_i32 : i32 to vector<1x8xi32>
    %88 = arith.cmpi eq, %63, %87 : vector<1x8xi32>
    %89 = arith.extui %88 : vector<1x8xi1> to vector<1x8xi32>
    %90 = arith.sitofp %89 : vector<1x8xi32> to vector<1x8xf32>
    %91 = vector.broadcast %57 : vector<2x1xf32> to vector<2x8xf32>
    %92 = vector.broadcast %90 : vector<1x8xf32> to vector<2x8xf32>
    %93 = arith.mulf %91, %92 : vector<2x8xf32>
    %94 = arith.addf %86, %93 : vector<2x8xf32>
    %c4_i32 = arith.constant 4 : i32
    %95 = vector.broadcast %c4_i32 : i32 to vector<1x8xi32>
    %96 = arith.cmpi eq, %63, %95 : vector<1x8xi32>
    %97 = arith.extui %96 : vector<1x8xi1> to vector<1x8xi32>
    %98 = arith.sitofp %97 : vector<1x8xi32> to vector<1x8xf32>
    %99 = vector.broadcast %62 : vector<2x1xf32> to vector<2x8xf32>
    %100 = vector.broadcast %98 : vector<1x8xf32> to vector<2x8xf32>
    %101 = arith.mulf %99, %100 : vector<2x8xf32>
    %102 = arith.addf %94, %101 : vector<2x8xf32>
    %c0_37 = arith.constant 0 : index
    %c0_38 = arith.constant 0 : index
    %103 = vector.load %arg11[%c0_37, %c0_38] : memref<8x64xf32, #tpu.memory_space<vmem>>, vector<8x64xf32>
    %cst_39 = arith.constant dense<0.000000e+00> : vector<2x64xf32>
    %104 = tpu.matmul %102, %103, %cst_39 {dimension_numbers = #tpu.dot_dimension_numbers<[1], [0], [0], [1], [0, 0, 1, 1], [], []>} : vector<2x8xf32>, vector<8x64xf32>, vector<2x64xf32> -> vector<2x64xf32>
    %c0_40 = arith.constant 0 : index
    %c0_41 = arith.constant 0 : index
    %105 = vector.load %arg12[%c0_40, %c0_41] : memref<1x64xf32, #tpu.memory_space<vmem>>, vector<1x64xf32>
    %106 = vector.broadcast %105 : vector<1x64xf32> to vector<2x64xf32>
    %107 = arith.addf %104, %106 : vector<2x64xf32>
    %cst_42 = arith.constant 0.000000e+00 : f32
    %108 = vector.broadcast %cst_42 : f32 to vector<2x64xf32>
    %109 = arith.maximumf %107, %108 : vector<2x64xf32>
    %c0_43 = arith.constant 0 : index
    %c0_44 = arith.constant 0 : index
    %110 = vector.load %arg13[%c0_43, %c0_44] : memref<64x128xf32, #tpu.memory_space<vmem>>, vector<64x128xf32>
    %cst_45 = arith.constant dense<0.000000e+00> : vector<2x128xf32>
    %111 = tpu.matmul %109, %110, %cst_45 {dimension_numbers = #tpu.dot_dimension_numbers<[1], [0], [0], [1], [0, 0, 1, 1], [], []>} : vector<2x64xf32>, vector<64x128xf32>, vector<2x128xf32> -> vector<2x128xf32>
    %c0_46 = arith.constant 0 : index
    %c0_47 = arith.constant 0 : index
    %112 = vector.load %arg14[%c0_46, %c0_47] : memref<1x128xf32, #tpu.memory_space<vmem>>, vector<1x128xf32>
    %113 = vector.broadcast %112 : vector<1x128xf32> to vector<2x128xf32>
    %114 = arith.addf %111, %113 : vector<2x128xf32>
    %cst_48 = arith.constant dense<0.000000e+00> : vector<2xf32>
    %115 = vector.multi_reduction <add>, %114, %cst_48 [1] : vector<2x128xf32> to vector<2xf32>
    %116 = vector.shape_cast %115 : vector<2xf32> to vector<2x1xf32>
    %cst_49 = arith.constant 1.280000e+02 : f32
    %117 = vector.broadcast %cst_49 : f32 to vector<2x1xf32>
    %118 = arith.divf %116, %117 : vector<2x1xf32>
    %119 = vector.broadcast %118 : vector<2x1xf32> to vector<2x128xf32>
    %120 = arith.subf %114, %119 : vector<2x128xf32>
    %121 = arith.mulf %120, %120 : vector<2x128xf32>
    %cst_50 = arith.constant dense<0.000000e+00> : vector<2xf32>
    %122 = vector.multi_reduction <add>, %121, %cst_50 [1] : vector<2x128xf32> to vector<2xf32>
    %123 = vector.shape_cast %122 : vector<2xf32> to vector<2x1xf32>
    %cst_51 = arith.constant 1.280000e+02 : f32
    %124 = vector.broadcast %cst_51 : f32 to vector<2x1xf32>
    %125 = arith.divf %123, %124 : vector<2x1xf32>
    %126 = vector.broadcast %118 : vector<2x1xf32> to vector<2x128xf32>
    %127 = arith.subf %114, %126 : vector<2x128xf32>
    %cst_52 = arith.constant 9.99999974E-6 : f32
    %128 = vector.broadcast %cst_52 : f32 to vector<2x1xf32>
    %129 = arith.addf %125, %128 : vector<2x1xf32>
    %130 = math.rsqrt %129 : vector<2x1xf32>
    %131 = vector.broadcast %130 : vector<2x1xf32> to vector<2x128xf32>
    %132 = arith.mulf %127, %131 : vector<2x128xf32>
    %c0_53 = arith.constant 0 : index
    %c0_54 = arith.constant 0 : index
    %133 = vector.load %arg15[%c0_53, %c0_54] : memref<1x128xf32, #tpu.memory_space<vmem>>, vector<1x128xf32>
    %134 = vector.broadcast %133 : vector<1x128xf32> to vector<2x128xf32>
    %135 = arith.mulf %132, %134 : vector<2x128xf32>
    %c0_55 = arith.constant 0 : index
    %c0_56 = arith.constant 0 : index
    %136 = vector.load %arg16[%c0_55, %c0_56] : memref<1x128xf32, #tpu.memory_space<vmem>>, vector<1x128xf32>
    %137 = vector.broadcast %136 : vector<1x128xf32> to vector<2x128xf32>
    %138 = arith.addf %135, %137 : vector<2x128xf32>
    %c0_57 = arith.constant 0 : index
    %c0_58 = arith.constant 0 : index
    %139 = vector.load %arg17[%c0_57, %c0_58] : memref<2x128xf32, #tpu.memory_space<vmem>>, vector<2x128xf32>
    tpu.vector_store %arg17[%c0_57, %c0_58], %138 {strides = array<i32>} : memref<2x128xf32, #tpu.memory_space<vmem>>, vector<2x128xf32>,
    return
  }
  func.func @transform_0(%arg0: i32) -> (i32, i32) {
    %c0_i32 = arith.constant 0 : i32
    %c0_i32_0 = arith.constant 0 : i32
    return %arg0, %c0_i32 : i32, i32
  }
  func.func @transform_1(%arg0: i32) -> (i32, i32) {
    %c0_i32 = arith.constant 0 : i32
    %c0_i32_0 = arith.constant 0 : i32
    %c0_i32_1 = arith.constant 0 : i32
    return %c0_i32, %c0_i32_0 : i32, i32
  }
  func.func @transform_2(%arg0: i32) -> (i32, i32) {
    %c0_i32 = arith.constant 0 : i32
    %c0_i32_0 = arith.constant 0 : i32
    %c0_i32_1 = arith.constant 0 : i32
    return %c0_i32, %c0_i32_0 : i32, i32
  }
  func.func @transform_3(%arg0: i32) -> (i32, i32) {
    %c0_i32 = arith.constant 0 : i32
    %c0_i32_0 = arith.constant 0 : i32
    %c0_i32_1 = arith.constant 0 : i32
    return %c0_i32, %c0_i32_0 : i32, i32
  }
  func.func @transform_4(%arg0: i32) -> (i32, i32) {
    %c0_i32 = arith.constant 0 : i32
    %c0_i32_0 = arith.constant 0 : i32
    %c0_i32_1 = arith.constant 0 : i32
    return %c0_i32, %c0_i32_0 : i32, i32
  }
  func.func @transform_5(%arg0: i32) -> (i32, i32) {
    %c0_i32 = arith.constant 0 : i32
    %c0_i32_0 = arith.constant 0 : i32
    %c0_i32_1 = arith.constant 0 : i32
    return %c0_i32, %c0_i32_0 : i32, i32
  }
  func.func @transform_6(%arg0: i32) -> (i32, i32) {
    %c0_i32 = arith.constant 0 : i32
    %c0_i32_0 = arith.constant 0 : i32
    %c0_i32_1 = arith.constant 0 : i32
    return %c0_i32, %c0_i32_0 : i32, i32
  }
  func.func @transform_7(%arg0: i32) -> (i32, i32) {
    %c0_i32 = arith.constant 0 : i32
    %c0_i32_0 = arith.constant 0 : i32
    %c0_i32_1 = arith.constant 0 : i32
    return %c0_i32, %c0_i32_0 : i32, i32
  }
  func.func @transform_8(%arg0: i32) -> (i32, i32) {
    %c0_i32 = arith.constant 0 : i32
    %c0_i32_0 = arith.constant 0 : i32
    %c0_i32_1 = arith.constant 0 : i32
    return %c0_i32, %c0_i32_0 : i32, i32
  }
  func.func @transform_9(%arg0: i32) -> (i32, i32) {
    %c0_i32 = arith.constant 0 : i32
    %c0_i32_0 = arith.constant 0 : i32
    %c0_i32_1 = arith.constant 0 : i32
    return %c0_i32, %c0_i32_0 : i32, i32
  }
  func.func @transform_10(%arg0: i32) -> (i32, i32) {
    %c0_i32 = arith.constant 0 : i32
    %c0_i32_0 = arith.constant 0 : i32
    %c0_i32_1 = arith.constant 0 : i32
    return %c0_i32, %c0_i32_0 : i32, i32
  }
  func.func @transform_11(%arg0: i32) -> (i32, i32) {
    %c0_i32 = arith.constant 0 : i32
    %c0_i32_0 = arith.constant 0 : i32
    %c0_i32_1 = arith.constant 0 : i32
    return %c0_i32, %c0_i32_0 : i32, i32
  }
  func.func @transform_12(%arg0: i32) -> (i32, i32) {
    %c0_i32 = arith.constant 0 : i32
    %c0_i32_0 = arith.constant 0 : i32
    %c0_i32_1 = arith.constant 0 : i32
    return %c0_i32, %c0_i32_0 : i32, i32
  }
  func.func @transform_13(%arg0: i32) -> (i32, i32) {
    %c0_i32 = arith.constant 0 : i32
    %c0_i32_0 = arith.constant 0 : i32
    %c0_i32_1 = arith.constant 0 : i32
    return %c0_i32, %c0_i32_0 : i32, i32
  }
  func.func @transform_14(%arg0: i32) -> (i32, i32) {
    %c0_i32 = arith.constant 0 : i32
    %c0_i32_0 = arith.constant 0 : i32
    %c0_i32_1 = arith.constant 0 : i32
    return %c0_i32, %c0_i32_0 : i32, i32
  }
  func.func @transform_15(%arg0: i32) -> (i32, i32) {
    %c0_i32 = arith.constant 0 : i32
    %c0_i32_0 = arith.constant 0 : i32
    %c0_i32_1 = arith.constant 0 : i32
    return %c0_i32, %c0_i32_0 : i32, i32
  }
  func.func @transform_16(%arg0: i32) -> (i32, i32) {
    %c0_i32 = arith.constant 0 : i32
    %c0_i32_0 = arith.constant 0 : i32
    return %arg0, %c0_i32 : i32, i32
  }
}

</mosaic_0001>

<bundles_post_ra>
// kernel: tpu_custom_call.1
= control target key start
LH: loop header
LB: loop body
LE: loop exit
PB: predicated region body
PF: predicated region fallthrough
CT: control target
= control target key end

     0   :  { %s2101_s0 = inlined_call_operand.hbm [shape: f32[2,128], index: 0, kind: input, shape index: {}]   ;;  %s2102_s1 = inlined_call_operand.hbm [shape: f32[128,128], index: 1, kind: input, shape index: {}]   ;;  %s2103_s2 = inlined_call_operand.hbm [shape: f32[128,128], index: 2, kind: input, shape index: {}]   ;;  %s2104_s3 = inlined_call_operand.hbm [shape: f32[128,128], index: 3, kind: input, shape index: {}]   ;;  %s2105_s4 = inlined_call_operand.hbm [shape: f32[128,128], index: 4, kind: input, shape index: {}]   ;;  %s2106_s5 = inlined_call_operand.vmem [shape: f32[1,128], index: 5, kind: input, shape index: {}]   ;;  %s2107_s6 = inlined_call_operand.hbm [shape: f32[128,128], index: 6, kind: input, shape index: {}]   ;;  %s2108_s7 = inlined_call_operand.hbm [shape: f32[128,128], index: 7, kind: input, shape index: {}]   ;;  %s2109_s8 = inlined_call_operand.vmem [shape: f32[1,128], index: 8, kind: input, shape index: {}]   ;;  %s2110_s9 = inlined_call_operand.vmem [shape: f32[1,128], index: 9, kind: input, shape index: {}]   ;;  %s2111_s10 = inlined_call_operand.vmem [shape: f32[8,64], index: 10, kind: input, shape index: {}]   ;;  %s2112_s11 = inlined_call_operand.vmem [shape: f32[1,64], index: 11, kind: input, shape index: {}]   ;;  %s2113_s12 = inlined_call_operand.hbm [shape: f32[64,128], index: 12, kind: input, shape index: {}]   ;;  %s2114_s13 = inlined_call_operand.vmem [shape: f32[1,128], index: 13, kind: input, shape index: {}]   ;;  %s2115_s14 = inlined_call_operand.vmem [shape: f32[1,128], index: 14, kind: input, shape index: {}]   ;;  %s2116_s15 = inlined_call_operand.vmem [shape: f32[1,128], index: 15, kind: input, shape index: {}]   ;;  %s2117_s16 = inlined_call_operand.hbm [shape: f32[2,128], index: 16, kind: output, shape index: {}]  }
   0x1   :  { %2120 = sst [smem:[#allocation23_spill]] %s2101_s0 }
   0x2   :  { %2121 = sst [smem:[#allocation24_spill]] %s2117_s16 }
   0x3   :  { %21 = vsyncpa [#allocation3], 0 }
   0x4   :  { %22 = vsyncpa [#allocation6], 0 }
   0x5   :  { %23 = vsyncpa [#allocation9], 0 }
   0x6   :  { %24 = vsyncpa [#allocation12], 0 }
   0x7   :  { %25 = vsyncpa [#allocation15], 0 }
   0x8   :  { %26 = vsyncpa [#allocation4], 0  ;;  %s1757_s21 = smov [#allocation5]   ;;  %s1547_s25 = scalar_lea.hbm %s2102_s1, 2048 }
   0x9   :  { %s42_s22 = sshll.u32 %s1757_s21, 4  ;;  %p1548_p0 = scmp.ne.s32.totalorder %s2102_s1, %s1547_s25  ;;  %s43_s22 = int_to_ptr.vmem [resolvable:$true] %s42_s22 }
   0xa   :  { %p1551_p1 = scmp.lt.u32.totalorder %s1547_s25, %s2102_s1 }
   0xc   :  { %p1553_p2 = pnand %p1551_p1, %p1548_p0 }
   0xe   :  { %1556 = shalt.err (!%p1553_p2)
}
   0xf   :  { %s1557_s30 = scalar_lea.vmem %s43_s22, 2048  ;;  %p1562_p4 = scmp.lt.s32.totalorder %s43_s22, %s43_s22 }
  0x10   :  { %p1558_p3 = scmp.ne.s32.totalorder %s43_s22, %s1557_s30  ;;  %p1563_p5 = scmp.lt.s32.totalorder %s1557_s30, %s1557_s30 }
  0x12   :  { %p1564_p6 = por %p1563_p5, %p1562_p4 }
  0x14   :  { %p1565_p7 = pnand %p1564_p6, %p1558_p3 }
  0x16   :  { %1568 = shalt.err (!%p1565_p7)
}
  0x17   :  { %s1758_s0 = smov 128   ;;  %s1759_s17 = smov 8  }
  0x18   :  { %48 = dma.hbm_to_vmem [thread:$0]  %s2102_s1, 2048, %s43_s22, [#allocation6], %s1758_s0, %s1758_s0, %s1759_s17  }
  0x19   :  { %s1760_s20 = smov [#allocation8]   ;;  %s1761_s23 = smov [#allocation11]  }
  0x1a   :  { %s66_s21 = sshll.u32 %s1760_s20, 4  ;;  %s92_s24 = sshll.u32 %s1761_s23, 4  ;;  %s67_s21 = int_to_ptr.vmem [resolvable:$true] %s66_s21  ;;  %s93_s24 = int_to_ptr.vmem [resolvable:$true] %s92_s24 }
  0x1b   :  { %s1569_s27 = scalar_lea.hbm %s2104_s3, 2048 }
  0x1c   :  { %p1570_p8 = scmp.ne.s32.totalorder %s2104_s3, %s1569_s27  ;;  %p1573_p9 = scmp.lt.u32.totalorder %s1569_s27, %s2104_s3 }
  0x1e   :  { %p1575_p10 = pnand %p1573_p9, %p1570_p8 }
  0x20   :  { %1578 = shalt.err (!%p1575_p10)
}
  0x21   :  { %s1579_s1 = scalar_lea.vmem %s67_s21, 2048  ;;  %p1584_p12 = scmp.lt.s32.totalorder %s67_s21, %s67_s21 }
  0x22   :  { %p1580_p11 = scmp.ne.s32.totalorder %s67_s21, %s1579_s1  ;;  %p1585_p13 = scmp.lt.s32.totalorder %s1579_s1, %s1579_s1 }
  0x24   :  { %p1586_p0 = por %p1585_p13, %p1584_p12 }
  0x26   :  { %p1587_p1 = pnand %p1586_p0, %p1580_p11 }
  0x28   :  { %1590 = shalt.err (!%p1587_p1)
}
  0x29   :  { %72 = dma.hbm_to_vmem [thread:$0]  %s2104_s3, 2048, %s67_s21, [#allocation9], %s1758_s0, %s1758_s0, %s1759_s17  }
  0x2a   :  { %s1591_s20 = scalar_lea.hbm %s2107_s6, 2048 }
  0x2b   :  { %p1592_p2 = scmp.ne.s32.totalorder %s2107_s6, %s1591_s20  ;;  %p1595_p3 = scmp.lt.u32.totalorder %s1591_s20, %s2107_s6 }
  0x2d   :  { %p1597_p4 = pnand %p1595_p3, %p1592_p2 }
  0x2f   :  { %1600 = shalt.err (!%p1597_p4)
}
  0x30   :  { %s1601_s28 = scalar_lea.vmem %s93_s24, 2048  ;;  %p1606_p6 = scmp.lt.s32.totalorder %s93_s24, %s93_s24 }
  0x31   :  { %p1602_p5 = scmp.ne.s32.totalorder %s93_s24, %s1601_s28  ;;  %p1607_p7 = scmp.lt.s32.totalorder %s1601_s28, %s1601_s28 }
  0x33   :  { %p1608_p8 = por %p1607_p7, %p1606_p6 }
  0x35   :  { %p1609_p9 = pnand %p1608_p8, %p1602_p5 }
  0x37   :  { %1612 = shalt.err (!%p1609_p9)
}
  0x38   :  { %98 = dma.hbm_to_vmem [thread:$0]  %s2107_s6, 2048, %s93_s24, [#allocation12], %s1758_s0, %s1758_s0, %s1759_s17  }
  0x39   :  { %s1762_s29 = smov [#allocation2]   ;;  %s1763_s1 = smov [#allocation7]  }
  0x3a   :  { %s33_s30 = sshll.u32 %s1762_s29, 4  ;;  %s54_s22 = sshll.u32 %s1763_s1, 4  ;;  %s34_s30 = int_to_ptr.vmem [resolvable:$true] %s33_s30  ;;  %s55_s22 = int_to_ptr.vmem [resolvable:$true] %s54_s22 }
  0x3b   :  { %s2122_s16 = sld [smem:[#allocation23_spill]] }
  0x41   :  { %s1613_s20 = scalar_lea.hbm %s2122_s16, 32 }
  0x42   :  { %p1614_p10 = scmp.ne.s32.totalorder %s2122_s16, %s1613_s20  ;;  %p1617_p11 = scmp.lt.u32.totalorder %s1613_s20, %s2122_s16 }
  0x44   :  { %p1619_p12 = pnand %p1617_p11, %p1614_p10 }
  0x46   :  { %1622 = shalt.err (!%p1619_p12)
}
  0x47   :  { %s1623_s6 = scalar_lea.vmem %s34_s30, 32  ;;  %p1628_p0 = scmp.lt.s32.totalorder %s34_s30, %s34_s30 }
  0x48   :  { %p1624_p13 = scmp.ne.s32.totalorder %s34_s30, %s1623_s6  ;;  %p1629_p1 = scmp.lt.s32.totalorder %s1623_s6, %s1623_s6 }
  0x4a   :  { %p1630_p2 = por %p1629_p1, %p1628_p0 }
  0x4c   :  { %p1631_p3 = pnand %p1630_p2, %p1624_p13 }
  0x4e   :  { %1634 = shalt.err (!%p1631_p3)
}
  0x4f   :  { %36 = dma.hbm_to_vmem [thread:$0]  %s2122_s16, 32, %s34_s30, [#allocation3]  }
  0x50   :  { %s1635_s29 = scalar_lea.hbm %s2103_s2, 2048 }
  0x51   :  { %p1636_p4 = scmp.ne.s32.totalorder %s2103_s2, %s1635_s29  ;;  %p1639_p5 = scmp.lt.u32.totalorder %s1635_s29, %s2103_s2 }
  0x53   :  { %p1641_p6 = pnand %p1639_p5, %p1636_p4 }
  0x55   :  { %1644 = shalt.err (!%p1641_p6)
}
  0x56   :  { %s1645_s23 = scalar_lea.vmem %s55_s22, 2048  ;;  %p1650_p8 = scmp.lt.s32.totalorder %s55_s22, %s55_s22 }
  0x57   :  { %p1646_p7 = scmp.ne.s32.totalorder %s55_s22, %s1645_s23  ;;  %p1651_p9 = scmp.lt.s32.totalorder %s1645_s23, %s1645_s23 }
  0x59   :  { %p1652_p10 = por %p1651_p9, %p1650_p8 }
  0x5b   :  { %p1653_p11 = pnand %p1652_p10, %p1646_p7 }
  0x5d   :  { %1656 = shalt.err (!%p1653_p11)
}
  0x5e   :  { %60 = dma.hbm_to_vmem [thread:$0]  %s2103_s2, 2048, %s55_s22, [#allocation6], %s1758_s0, %s1758_s0, %s1759_s17  }
  0x5f   :  { %s1764_s25 = smov [#allocation10]   ;;  %s1765_s27 = smov [#allocation13]  }
  0x60   :  { %s78_s26 = sshll.u32 %s1764_s25, 4  ;;  %s104_s6 = sshll.u32 %s1765_s27, 4  ;;  %s79_s26 = int_to_ptr.vmem [resolvable:$true] %s78_s26  ;;  %s105_s6 = int_to_ptr.vmem [resolvable:$true] %s104_s6 }
  0x61   :  { %s1657_s3 = scalar_lea.hbm %s2105_s4, 2048 }
  0x62   :  { %p1658_p12 = scmp.ne.s32.totalorder %s2105_s4, %s1657_s3  ;;  %p1661_p13 = scmp.lt.u32.totalorder %s1657_s3, %s2105_s4 }
  0x64   :  { %p1663_p0 = pnand %p1661_p13, %p1658_p12 }
  0x66   :  { %1666 = shalt.err (!%p1663_p0)
}
  0x67   :  { %s1667_s2 = scalar_lea.vmem %s79_s26, 2048  ;;  %p1672_p2 = scmp.lt.s32.totalorder %s79_s26, %s79_s26 }
  0x68   :  { %p1668_p1 = scmp.ne.s32.totalorder %s79_s26, %s1667_s2  ;;  %p1673_p3 = scmp.lt.s32.totalorder %s1667_s2, %s1667_s2 }
  0x6a   :  { %p1674_p4 = por %p1673_p3, %p1672_p2 }
  0x6c   :  { %p1675_p5 = pnand %p1674_p4, %p1668_p1 }
  0x6e   :  { %1678 = shalt.err (!%p1675_p5)
}
  0x6f   :  { %84 = dma.hbm_to_vmem [thread:$0]  %s2105_s4, 2048, %s79_s26, [#allocation9], %s1758_s0, %s1758_s0, %s1759_s17  }
  0x70   :  { %s1679_s30 = scalar_lea.hbm %s2108_s7, 2048 }
  0x71   :  { %p1680_p6 = scmp.ne.s32.totalorder %s2108_s7, %s1679_s30  ;;  %p1683_p7 = scmp.lt.u32.totalorder %s1679_s30, %s2108_s7 }
  0x73   :  { %p1685_p8 = pnand %p1683_p7, %p1680_p6 }
  0x75   :  { %1688 = shalt.err (!%p1685_p8)
}
  0x76   :  { %s1689_s28 = scalar_lea.vmem %s105_s6, 2048  ;;  %p1694_p10 = scmp.lt.s32.totalorder %s105_s6, %s105_s6 }
  0x77   :  { %p1690_p9 = scmp.ne.s32.totalorder %s105_s6, %s1689_s28  ;;  %p1695_p11 = scmp.lt.s32.totalorder %s1689_s28, %s1689_s28 }
  0x79   :  { %p1696_p12 = por %p1695_p11, %p1694_p10 }
  0x7b   :  { %p1697_p13 = pnand %p1696_p12, %p1690_p9 }
  0x7d   :  { %1700 = shalt.err (!%p1697_p13)
}
  0x7e   :  { %110 = dma.hbm_to_vmem [thread:$0]  %s2108_s7, 2048, %s105_s6, [#allocation12], %s1758_s0, %s1758_s0, %s1759_s17  }
  0x7f   :  { %s1766_s3 = smov [#allocation14]   ;;  %s1701_s18 = scalar_lea.hbm %s2113_s12, 1024 }
  0x80   :  { %s124_s21 = sshll.u32 %s1766_s3, 4  ;;  %p1702_p0 = scmp.ne.s32.totalorder %s2113_s12, %s1701_s18  ;;  %s125_s21 = int_to_ptr.vmem [resolvable:$true] %s124_s21 }
  0x81   :  { %p1705_p1 = scmp.lt.u32.totalorder %s1701_s18, %s2113_s12 }
  0x83   :  { %p1707_p2 = pnand %p1705_p1, %p1702_p0 }
  0x85   :  { %1710 = shalt.err (!%p1707_p2)
}
  0x86   :  { %s1711_s23 = scalar_lea.vmem %s125_s21, 1024  ;;  %p1716_p4 = scmp.lt.s32.totalorder %s125_s21, %s125_s21 }
  0x87   :  { %p1712_p3 = scmp.ne.s32.totalorder %s125_s21, %s1711_s23  ;;  %p1717_p5 = scmp.lt.s32.totalorder %s1711_s23, %s1711_s23 }
  0x89   :  { %p1718_p6 = por %p1717_p5, %p1716_p4 }
  0x8b   :  { %p1719_p7 = pnand %p1718_p6, %p1712_p3 }
  0x8d   :  { %1722 = shalt.err (!%p1719_p7)
}
  0x8e   :  { %130 = dma.hbm_to_vmem [thread:$0]  %s2113_s12, 1024, %s125_s21, [#allocation15], %s1758_s0, %s1758_s0, %s1759_s17  }
  0x8f   :  { %1745 = dma.done.wait [#allocation3], 32  }
  0x90   :  { %1746 = vsyncadd [#allocation3], 4294967264 }
  0x91   :  { %1747 = dma.done.wait [#allocation6], 4096  }
  0x92   :  { %1748 = vsyncadd [#allocation6], 4294963200 }
  0x93   :  { %1749 = dma.done.wait [#allocation9], 4096  }
  0x94   :  { %1750 = vsyncadd [#allocation9], 4294963200 }
  0x95   :  { %1751 = dma.done.wait [#allocation12], 4096  }
  0x96   :  { %1752 = vsyncadd [#allocation12], 4294963200 }
  0x97   :  { %1753 = dma.done.wait [#allocation15], 1024  }
  0x98   :  { %1754 = vsyncadd [#allocation15], 4294966272  ;;  %v1767_v0 = vmov 0.0|0.0   ;;  %vm162_vm0 = vcmask 1041408   ;;  %v1975_v1 = vld [vmem:[#allocation2] sm:$0x3] }
  0x99   :  { %1367 = vmatprep.subr.bf16.mxu0 %v1767_v0  ;;  %1391 = vmatprep.subr.bf16.mxu1 %v1767_v0  ;;  %v170_v2 = vld [vmem:[#allocation5] sm:$0xff]  ;;  %v171_v3 = vld [vmem:[#allocation5 + $0x8] sm:$0xff]  ;;  %v163_v4 = vsel %vm162_vm0, %v1975_v1, -inf  ;;  %v172_v8 = vld [vmem:[#allocation5 + $0x10] sm:$0xff]  ;;  %vm1768_vm1 = vmmov 0   ;;  %v1769_v44 = vmov 0.0  }
  0x9a   :  { %v1368_v5 = vpack.c.bf16 %v171_v3, %v170_v2  ;;  %v256_v6 = vld [vmem:[#allocation7] sm:$0xff]  ;;  %v257_v7 = vld [vmem:[#allocation7 + $0x8] sm:$0xff]  ;;  %164 = vmax.xlane.f32.xlu0 %v163_v4  ;;  %v173_v10 = vld [vmem:[#allocation5 + $0x18] sm:$0xff]  ;;  %1165 = vmatprep.mubr.msk.f32.mxu0 %vm1768_vm1, %v1769_v44  ;;  %vm793_vm11 = vcmask 64512   ;;  %vm883_vm12 = vcmask 523264   ;;  %s1770_s26 = smov [#allocation16]  }
  0x9b   :  { %v1392_v9 = vpack.c.bf16 %v257_v7, %v256_v6  ;;  %v258_v11 = vld [vmem:[#allocation7 + $0x10] sm:$0xff]  ;;  %v259_v12 = vld [vmem:[#allocation7 + $0x18] sm:$0xff]  ;;  %v1371_v13 = vpack.c.bf16 %v173_v10, %v172_v8  ;;  %v174_v15 = vld [vmem:[#allocation5 + $0x20] sm:$0xff]  ;;  %1200 = vmatprep.mubr.msk.f32.mxu1 %vm1768_vm1, %v1769_v44  ;;  %s994_s3 = sshll.u32 %s1770_s26, 4  ;;  %s995_s3 = int_to_ptr.vmem [resolvable:$true] %s994_s3 }
  0x9c   :  { %1369 = vmatpush3.bf16.msra.mxu0 %v1368_v5  ;;  %v1395_v14 = vpack.c.bf16 %v259_v12, %v258_v11  ;;  %v175_v16 = vld [vmem:[#allocation5 + $0x28] sm:$0xff]  ;;  %v260_v17 = vld [vmem:[#allocation7 + $0x20] sm:$0xff]  ;;  %v176_v21 = vld [vmem:[#allocation5 + $0x30] sm:$0xff]  ;;  %s1723_s21 = scalar_lea.vmem %s995_s3, 32  ;;  %p1728_p9 = scmp.lt.s32.totalorder %s995_s3, %s995_s3 }
  0x9d   :  { %1393 = vmatpush3.bf16.msra.mxu1 %v1392_v9  ;;  %1370 = vmatprep.subr.bf16.mxu0 %v1767_v0  ;;  %v261_v18 = vld [vmem:[#allocation7 + $0x28] sm:$0xff]  ;;  %v1374_v19 = vpack.c.bf16 %v175_v16, %v174_v15  ;;  %v177_v22 = vld [vmem:[#allocation5 + $0x38] sm:$0xff]  ;;  %v262_v23 = vld [vmem:[#allocation7 + $0x30] sm:$0xff]  ;;  %p1724_p8 = scmp.ne.s32.totalorder %s995_s3, %s1723_s21  ;;  %p1729_p10 = scmp.lt.s32.totalorder %s1723_s21, %s1723_s21 }
  0x9e   :  { %1394 = vmatprep.subr.bf16.mxu1 %v1767_v0  ;;  %v1398_v20 = vpack.c.bf16 %v261_v18, %v260_v17  ;;  %v263_v24 = vld [vmem:[#allocation7 + $0x38] sm:$0xff]  ;;  %v1377_v25 = vpack.c.bf16 %v177_v22, %v176_v21  ;;  %v178_v27 = vld [vmem:[#allocation5 + $0x40] sm:$0xff]  ;;  %v179_v28 = vld [vmem:[#allocation5 + $0x48] sm:$0xff] }
  0x9f   :  { %v1401_v26 = vpack.c.bf16 %v263_v24, %v262_v23  ;;  %v264_v29 = vld [vmem:[#allocation7 + $0x40] sm:$0xff]  ;;  %v1380_v30 = vpack.c.bf16 %v179_v28, %v178_v27  ;;  %v265_v31 = vld [vmem:[#allocation7 + $0x48] sm:$0xff]  ;;  %v180_v33 = vld [vmem:[#allocation5 + $0x50] sm:$0xff]  ;;  %p1730_p11 = por %p1729_p10, %p1728_p9 }
  0xa0   :  { %1372 = vmatpush3.bf16.msra.mxu0 %v1371_v13  ;;  %v1404_v32 = vpack.c.bf16 %v265_v31, %v264_v29  ;;  %v181_v34 = vld [vmem:[#allocation5 + $0x58] sm:$0xff]  ;;  %v266_v35 = vld [vmem:[#allocation7 + $0x50] sm:$0xff]  ;;  %v182_v39 = vld [vmem:[#allocation5 + $0x60] sm:$0xff] }
  0xa1   :  { %1396 = vmatpush3.bf16.msra.mxu1 %v1395_v14  ;;  %1373 = vmatprep.subr.bf16.mxu0 %v1767_v0  ;;  %v1383_v36 = vpack.c.bf16 %v181_v34, %v180_v33  ;;  %v267_v37 = vld [vmem:[#allocation7 + $0x58] sm:$0xff]  ;;  %v183_v40 = vld [vmem:[#allocation5 + $0x68] sm:$0xff]  ;;  %v268_v41 = vld [vmem:[#allocation7 + $0x60] sm:$0xff]  ;;  %p1731_p12 = pnand %p1730_p11, %p1724_p8 }
  0xa2   :  { %1397 = vmatprep.subr.bf16.mxu1 %v1767_v0  ;;  %v1407_v38 = vpack.c.bf16 %v267_v37, %v266_v35  ;;  %v1386_v42 = vpack.c.bf16 %v183_v40, %v182_v39  ;;  %v269_v43 = vld [vmem:[#allocation7 + $0x68] sm:$0xff]  ;;  %v184_v46 = vld [vmem:[#allocation5 + $0x70] sm:$0xff]  ;;  %v185_v47 = vld [vmem:[#allocation5 + $0x78] sm:$0xff] }
  0xa3   :  { %v1410_v45 = vpack.c.bf16 %v269_v43, %v268_v41  ;;  %v270_v48 = vld [vmem:[#allocation7 + $0x70] sm:$0xff]  ;;  %v271_v49 = vld [vmem:[#allocation7 + $0x78] sm:$0xff]  ;;  %v1389_v50 = vpack.c.bf16 %v185_v47, %v184_v46  ;;  %v346_v56 = vld [vmem:[#allocation8] sm:$0xff] }
  0xa4   :  { %1375 = vmatpush3.bf16.msra.mxu0 %v1374_v19  ;;  %v1413_v51 = vpack.c.bf16 %v271_v49, %v270_v48  ;;  %v347_v57 = vld [vmem:[#allocation8 + $0x8] sm:$0xff]  ;;  %v439_v58 = vld [vmem:[#allocation10] sm:$0xff]  ;;  %v348_v62 = vld [vmem:[#allocation8 + $0x10] sm:$0xff] }
  0xa5   :  { %1399 = vmatpush3.bf16.msra.mxu1 %v1398_v20  ;;  %1376 = vmatprep.subr.bf16.mxu0 %v1767_v0  ;;  %v440_v59 = vld [vmem:[#allocation10 + $0x8] sm:$0xff]  ;;  %v1416_v60 = vpack.c.bf16 %v347_v57, %v346_v56  ;;  %v349_v63 = vld [vmem:[#allocation8 + $0x18] sm:$0xff]  ;;  %v441_v2 = vld [vmem:[#allocation10 + $0x10] sm:$0xff] }
  0xa6   :  { %1400 = vmatprep.subr.bf16.mxu1 %v1767_v0  ;;  %v1440_v61 = vpack.c.bf16 %v440_v59, %v439_v58  ;;  %v442_v3 = vld [vmem:[#allocation10 + $0x18] sm:$0xff]  ;;  %v1419_v5 = vpack.c.bf16 %v349_v63, %v348_v62  ;;  %v350_v6 = vld [vmem:[#allocation8 + $0x20] sm:$0xff]  ;;  %v351_v7 = vld [vmem:[#allocation8 + $0x28] sm:$0xff] }
  0xa7   :  { %v443_v8 = vld [vmem:[#allocation10 + $0x20] sm:$0xff]  ;;  %v444_v9 = vld [vmem:[#allocation10 + $0x28] sm:$0xff]  ;;  %v1422_v10 = vpack.c.bf16 %v351_v7, %v350_v6  ;;  %v352_v12 = vld [vmem:[#allocation8 + $0x30] sm:$0xff] }
  0xa8   :  { %1378 = vmatpush3.bf16.msra.mxu0 %v1377_v25  ;;  %v1446_v11 = vpack.c.bf16 %v444_v9, %v443_v8  ;;  %v353_v13 = vld [vmem:[#allocation8 + $0x38] sm:$0xff]  ;;  %v445_v14 = vld [vmem:[#allocation10 + $0x30] sm:$0xff]  ;;  %v354_v18 = vld [vmem:[#allocation8 + $0x40] sm:$0xff] }
  0xa9   :  { %1402 = vmatpush3.bf16.msra.mxu1 %v1401_v26  ;;  %1379 = vmatprep.subr.bf16.mxu0 %v1767_v0  ;;  %v446_v15 = vld [vmem:[#allocation10 + $0x38] sm:$0xff]  ;;  %v1425_v16 = vpack.c.bf16 %v353_v13, %v352_v12  ;;  %v355_v19 = vld [vmem:[#allocation8 + $0x48] sm:$0xff]  ;;  %v447_v20 = vld [vmem:[#allocation10 + $0x40] sm:$0xff] }
  0xaa   :  { %1403 = vmatprep.subr.bf16.mxu1 %v1767_v0  ;;  %v1449_v17 = vpack.c.bf16 %v446_v15, %v445_v14  ;;  %v1428_v21 = vpack.c.bf16 %v355_v19, %v354_v18  ;;  %v448_v22 = vld [vmem:[#allocation10 + $0x48] sm:$0xff]  ;;  %v356_v24 = vld [vmem:[#allocation8 + $0x50] sm:$0xff]  ;;  %v357_v25 = vld [vmem:[#allocation8 + $0x58] sm:$0xff] }
  0xab   :  { %v1452_v23 = vpack.c.bf16 %v448_v22, %v447_v20  ;;  %v449_v26 = vld [vmem:[#allocation10 + $0x50] sm:$0xff]  ;;  %v1431_v27 = vpack.c.bf16 %v357_v25, %v356_v24  ;;  %v450_v28 = vld [vmem:[#allocation10 + $0x58] sm:$0xff]  ;;  %v358_v29 = vld [vmem:[#allocation8 + $0x60] sm:$0xff] }
  0xac   :  { %1381 = vmatpush3.bf16.msra.mxu0 %v1380_v30  ;;  %v359_v30 = vld [vmem:[#allocation8 + $0x68] sm:$0xff]  ;;  %v1455_v31 = vpack.c.bf16 %v450_v28, %v449_v26  ;;  %v361_v37 = vld [vmem:[#allocation8 + $0x78] sm:$0xff]  ;;  %v562_v48 = vld [vmem:[#allocation11] sm:$0xff] }
  0xad   :  { %1405 = vmatpush3.bf16.msra.mxu1 %v1404_v32  ;;  %1382 = vmatprep.subr.bf16.mxu0 %v1767_v0  ;;  %v451_v32 = vld [vmem:[#allocation10 + $0x60] sm:$0xff]  ;;  %v452_v33 = vld [vmem:[#allocation10 + $0x68] sm:$0xff]  ;;  %v1434_v34 = vpack.c.bf16 %v359_v30, %v358_v29  ;;  %v454_v39 = vld [vmem:[#allocation10 + $0x78] sm:$0xff] }
  0xae   :  { %1406 = vmatprep.subr.bf16.mxu1 %v1767_v0  ;;  %v1458_v35 = vpack.c.bf16 %v452_v33, %v451_v32  ;;  %v563_v49 = vld [vmem:[#allocation11 + $0x8] sm:$0xff]  ;;  %v565_v57 = vld [vmem:[#allocation11 + $0x18] sm:$0xff]  ;;  %v650_v58 = vld [vmem:[#allocation13 + $0x10] sm:$0xff] }
  0xaf   :  { %v651_v59 = vld [vmem:[#allocation13 + $0x18] sm:$0xff]  ;;  %v566_v62 = vld [vmem:[#allocation11 + $0x20] sm:$0xff]  ;;  %v567_v63 = vld [vmem:[#allocation11 + $0x28] sm:$0xff] }
  0xb0   :  { %1384 = vmatpush3.bf16.msra.mxu0 %v1383_v36  ;;  %v360_v36 = vld [vmem:[#allocation8 + $0x70] sm:$0xff]  ;;  %v569_v6 = vld [vmem:[#allocation11 + $0x38] sm:$0xff]  ;;  %v571_v12 = vld [vmem:[#allocation11 + $0x48] sm:$0xff] }
  0xb1   :  { %1408 = vmatpush3.bf16.msra.mxu1 %v1407_v38  ;;  %1385 = vmatprep.subr.bf16.mxu0 %v1767_v0  ;;  %v453_v38 = vld [vmem:[#allocation10 + $0x70] sm:$0xff]  ;;  %v1437_v40 = vpack.c.bf16 %v361_v37, %v360_v36  ;;  %v655_v8 = vld [vmem:[#allocation13 + $0x38] sm:$0xff]  ;;  %v656_v13 = vld [vmem:[#allocation13 + $0x40] sm:$0xff] }
  0xb2   :  { %1409 = vmatprep.subr.bf16.mxu1 %v1767_v0  ;;  %v1461_v41 = vpack.c.bf16 %v454_v39, %v453_v38  ;;  %v654_v7 = vld [vmem:[#allocation13 + $0x30] sm:$0xff]  ;;  %v657_v14 = vld [vmem:[#allocation13 + $0x48] sm:$0xff]  ;;  %v573_v18 = vld [vmem:[#allocation11 + $0x58] sm:$0xff] }
  0xb3   :  { %v658_v19 = vld [vmem:[#allocation13 + $0x50] sm:$0xff]  ;;  %v659_v20 = vld [vmem:[#allocation13 + $0x58] sm:$0xff]  ;;  %v575_v24 = vld [vmem:[#allocation11 + $0x68] sm:$0xff] }
  0xb4   :  { %1387 = vmatpush3.bf16.msra.mxu0 %v1386_v42  ;;  %v1503_v22 = vpack.c.bf16 %v659_v20, %v658_v19  ;;  %v660_v25 = vld [vmem:[#allocation13 + $0x60] sm:$0xff]  ;;  %v661_v26 = vld [vmem:[#allocation13 + $0x68] sm:$0xff]  ;;  %v576_v29 = vld [vmem:[#allocation11 + $0x70] sm:$0xff] }
  0xb5   :  { %1411 = vmatpush3.bf16.msra.mxu1 %v1410_v45  ;;  %1388 = vmatprep.subr.bf16.mxu0 %v1767_v0  ;;  %v1506_v28 = vpack.c.bf16 %v661_v26, %v660_v25  ;;  %v577_v30 = vld [vmem:[#allocation11 + $0x78] sm:$0xff]  ;;  %v345_v37 = vld [vmem:[%s2106_s5] sm:$0x1] }
  0xb6   :  { %1412 = vmatprep.subr.bf16.mxu1 %v1767_v0  ;;  %v1485_v32 = vpack.c.bf16 %v577_v30, %v576_v29  ;;  %v663_v33 = vld [vmem:[#allocation13 + $0x78] sm:$0xff]  ;;  %v362_v38 = vmul.f32 0.5, %v345_v37 }
  0xb8   :  { %1390 = vmatpush3.bf16.msra.mxu0 %v1389_v50  ;;  %v648_v50 = vld [vmem:[#allocation13] sm:$0xff] }
  0xb9   :  { %1414 = vmatpush3.bf16.msra.mxu1 %v1413_v51  ;;  %1415 = vmatprep.subr.bf16.mxu0 %v1767_v0  ;;  %v649_v51 = vld [vmem:[#allocation13 + $0x8] sm:$0xff] }
  0xba   :  { %1439 = vmatprep.subr.bf16.mxu1 %v1767_v0 }
 0x127   :  { %v165_v52 = vpop.xlane.xlu0 %164 }
 0x128   :  { %v166_v53 = vsub.f32 %v1975_v1, %v165_v52  ;;  %v1443_v1 = vpack.c.bf16 %v442_v3, %v441_v2  ;;  %v652_v2 = vld [vmem:[#allocation13 + $0x20] sm:$0xff]  ;;  %v653_v3 = vld [vmem:[#allocation13 + $0x28] sm:$0xff] }
 0x12a   :  { %v167_v54 = vmul.f32 10.0, %v166_v53  ;;  %v1464_v53 = vpack.c.bf16 %v563_v49, %v562_v48 }
 0x12c   :  { %v168_v55 = vmul.f32 1.442695, %v167_v54  ;;  %v1488_v54 = vpack.c.bf16 %v649_v51, %v648_v50 }
 0x12e   :  { %1537 = vpow2.f32 %v168_v55  ;;  %v564_v55 = vld [vmem:[#allocation11 + $0x10] sm:$0xff] }
 0x138   :  { %v1538_v4 = vpop.eup %1537 }
 0x139   :  { %1166 = vmatmul.mubr.f32.vlgmr.msra.gmra.mrb[0].mxu0 %v1538_v4  ;;  %1201 = vmatmul.mubr.f32.vlgmr.msra.gmra.mrb[0].mxu1 %v1538_v4  ;;  %v1470_v4 = vpack.c.bf16 %v567_v63, %v566_v62  ;;  %v1008_v63 = vld [vmem:[%s2110_s9] ss:$0 sm:$0xff] }
 0x13a   :  { %1417 = vmatpush3.bf16.msra.mxu0 %v1416_v60  ;;  %1441 = vmatpush3.bf16.msra.mxu1 %v1440_v61  ;;  %v1467_v60 = vpack.c.bf16 %v565_v57, %v564_v55  ;;  %v1491_v61 = vpack.c.bf16 %v651_v59, %v650_v58 }
 0x13b   :  { %1418 = vmatprep.subr.bf16.mxu0 %v1767_v0  ;;  %1442 = vmatprep.subr.bf16.mxu1 %v1767_v0 }
 0x13c   :  { %1235 = vmatprep.mubr.msk.f32.mxu0 %vm1768_vm1, %v1769_v44  ;;  %1270 = vmatprep.mubr.msk.f32.mxu1 %vm1768_vm1, %v1769_v44 }
 0x13e   :  { %1420 = vmatpush3.bf16.msra.mxu0 %v1419_v5  ;;  %1444 = vmatpush3.bf16.msra.mxu1 %v1443_v1  ;;  %v1494_v5 = vpack.c.bf16 %v653_v3, %v652_v2  ;;  %v568_v1 = vld [vmem:[#allocation11 + $0x30] sm:$0xff] }
 0x13f   :  { %1421 = vmatprep.subr.bf16.mxu0 %v1767_v0  ;;  %1445 = vmatprep.subr.bf16.mxu1 %v1767_v0  ;;  %v1473_v9 = vpack.c.bf16 %v569_v6, %v568_v1  ;;  %v1007_v2 = vld [vmem:[%s2109_s8] ss:$0 sm:$0xff] }
 0x142   :  { %1423 = vmatpush3.bf16.msra.mxu0 %v1422_v10  ;;  %1447 = vmatpush3.bf16.msra.mxu1 %v1446_v11  ;;  %v1497_v10 = vpack.c.bf16 %v655_v8, %v654_v7  ;;  %v570_v11 = vld [vmem:[#allocation11 + $0x40] sm:$0xff]  ;;  %v785_v7 = vld [vmem:[%s2111_s10] sm:$0xff] }
 0x143   :  { %1424 = vmatprep.subr.bf16.mxu0 %v1767_v0  ;;  %1448 = vmatprep.subr.bf16.mxu1 %v1767_v0  ;;  %v1476_v15 = vpack.c.bf16 %v571_v12, %v570_v11  ;;  %v868_v8 = vld [vmem:[#allocation14] sm:$0xff]  ;;  %v871_v12 = vld [vmem:[#allocation14 + $0x18] sm:$0xff] }
 0x146   :  { %1426 = vmatpush3.bf16.msra.mxu0 %v1425_v16  ;;  %1450 = vmatpush3.bf16.msra.mxu1 %v1449_v17  ;;  %v1500_v16 = vpack.c.bf16 %v657_v14, %v656_v13  ;;  %v572_v17 = vld [vmem:[#allocation11 + $0x50] sm:$0xff]  ;;  %v872_v14 = vld [vmem:[#allocation14 + $0x20] sm:$0xff] }
 0x147   :  { %1427 = vmatprep.subr.bf16.mxu0 %v1767_v0  ;;  %1451 = vmatprep.subr.bf16.mxu1 %v1767_v0 }
 0x14a   :  { %1429 = vmatpush3.bf16.msra.mxu0 %v1428_v21  ;;  %1453 = vmatpush3.bf16.msra.mxu1 %v1452_v23  ;;  %v1479_v21 = vpack.c.bf16 %v573_v18, %v572_v17  ;;  %v574_v23 = vld [vmem:[#allocation11 + $0x60] sm:$0xff] }
 0x14b   :  { %1430 = vmatprep.subr.bf16.mxu0 %v1767_v0  ;;  %1454 = vmatprep.subr.bf16.mxu1 %v1767_v0 }
 0x14e   :  { %1432 = vmatpush3.bf16.msra.mxu0 %v1431_v27  ;;  %1456 = vmatpush3.bf16.msra.mxu1 %v1455_v31  ;;  %v1482_v27 = vpack.c.bf16 %v575_v24, %v574_v23  ;;  %v662_v31 = vld [vmem:[#allocation13 + $0x70] sm:$0xff] }
 0x14f   :  { %1433 = vmatprep.subr.bf16.mxu0 %v1767_v0  ;;  %1457 = vmatprep.subr.bf16.mxu1 %v1767_v0 }
 0x152   :  { %1435 = vmatpush3.bf16.msra.mxu0 %v1434_v34  ;;  %1459 = vmatpush3.bf16.msra.mxu1 %v1458_v35  ;;  %v1509_v34 = vpack.c.bf16 %v663_v33, %v662_v31  ;;  %v364_v35 = vlaneseq }
 0x153   :  { %1436 = vmatprep.subr.bf16.mxu0 %v1767_v0  ;;  %1460 = vmatprep.subr.bf16.mxu1 %v1767_v0 }
 0x154   :  { %v365_v36 = vshrl.u32 %v364_v35, 7  ;;  %v760_v25 = vand.u32 127, %v364_v35 }
 0x156   :  { %1438 = vmatpush3.bf16.msra.mxu0 %v1437_v40  ;;  %1462 = vmatpush3.bf16.msra.mxu1 %v1461_v41  ;;  %v366_v39 = vsub.s32 0, %v365_v36  ;;  %vm765_vm3 = vcmp.eq.s32.totalorder %v760_v25, 1  ;;  %vm761_vm6 = vcmp.eq.s32.totalorder %v760_v25, 0  ;;  %vm770_vm7 = vcmp.eq.s32.totalorder %v760_v25, 2 }
 0x157   :  { %1463 = vmatprep.subr.bf16.mxu0 %v1767_v0  ;;  %1487 = vmatprep.subr.bf16.mxu1 %v1767_v0  ;;  %v1010_v30 = vsel %vm765_vm3, 1.0, %v1769_v44  ;;  %vm775_vm9 = vcmp.eq.s32.totalorder %v760_v25, 3  ;;  %vm780_vm10 = vcmp.eq.s32.totalorder %v760_v25, 4 }
 0x158   :  { %v367_v40 = vrot.slane %v362_v38, %v366_v39  ;;  %v1012_v38 = vsel %vm775_vm9, 1.0, %v1769_v44 }
 0x20c   :  { %v252_v42 = vpop.f32.mrb[0].mxu0  ;;  %v338_v43 = vpop.f32.mrb[0].mxu1 }
 0x20d   :  { %v342_v45 = vmax.f32 %v338_v43, 1e-30  ;;  %v1167_v46 = vpop.f32.mrb[1].mxu0  ;;  %v1202_v47 = vpop.f32.mrb[1].mxu1 }
 0x20f   :  { %1539 = vrcp.f32 %v342_v45 }
 0x219   :  { %v1540_v52 = vpop.eup %1539 }
 0x21a   :  { %v344_v56 = vmul.f32 %v1540_v52, %v252_v42  ;;  %v547_v52 = vrot.slane %v345_v37, %v366_v39 }
 0x21c   :  { %1236 = vmatmul.mubr.f32.vlgmr.msra.gmra.mrb[2].mxu0 %v344_v56  ;;  %1271 = vmatmul.mubr.f32.vlgmr.msra.gmra.mrb[2].mxu1 %v344_v56 }
 0x21d   :  { %1465 = vmatpush3.bf16.msra.mxu0 %v1464_v53  ;;  %1489 = vmatpush3.bf16.msra.mxu1 %v1488_v54 }
 0x21e   :  { %1466 = vmatprep.subr.bf16.mxu0 %v1767_v0  ;;  %1490 = vmatprep.subr.bf16.mxu1 %v1767_v0 }
 0x21f   :  { %1305 = vmatprep.mubr.msk.f32.mxu0 %vm1768_vm1, %v1769_v44  ;;  %1340 = vmatprep.mubr.msk.f32.mxu1 %vm1768_vm1, %v1769_v44 }
 0x221   :  { %1468 = vmatpush3.bf16.msra.mxu0 %v1467_v60  ;;  %1492 = vmatpush3.bf16.msra.mxu1 %v1491_v61 }
 0x222   :  { %1469 = vmatprep.subr.bf16.mxu0 %v1767_v0  ;;  %1493 = vmatprep.subr.bf16.mxu1 %v1767_v0 }
 0x225   :  { %1471 = vmatpush3.bf16.msra.mxu0 %v1470_v4  ;;  %1495 = vmatpush3.bf16.msra.mxu1 %v1494_v5 }
 0x226   :  { %1472 = vmatprep.subr.bf16.mxu0 %v1767_v0  ;;  %1496 = vmatprep.subr.bf16.mxu1 %v1767_v0 }
 0x229   :  { %1474 = vmatpush3.bf16.msra.mxu0 %v1473_v9  ;;  %1498 = vmatpush3.bf16.msra.mxu1 %v1497_v10  ;;  %v869_v9 = vld [vmem:[#allocation14 + $0x8] sm:$0xff]  ;;  %v870_v10 = vld [vmem:[#allocation14 + $0x10] sm:$0xff] }
 0x22a   :  { %1475 = vmatprep.subr.bf16.mxu0 %v1767_v0  ;;  %1499 = vmatprep.subr.bf16.mxu1 %v1767_v0  ;;  %v1512_v11 = vpack.c.bf16 %v869_v9, %v868_v8  ;;  %v1515_v13 = vpack.c.bf16 %v871_v12, %v870_v10  ;;  %v1019_v9 = vld [vmem:[%s2116_s15] ss:$0 sm:$0xff] }
 0x22d   :  { %1477 = vmatpush3.bf16.msra.mxu0 %v1476_v15  ;;  %1501 = vmatpush3.bf16.msra.mxu1 %v1500_v16  ;;  %v873_v15 = vld [vmem:[#allocation14 + $0x28] sm:$0xff] }
 0x22e   :  { %1478 = vmatprep.subr.bf16.mxu0 %v1767_v0  ;;  %1502 = vmatprep.subr.bf16.mxu1 %v1767_v0  ;;  %v1518_v16 = vpack.c.bf16 %v873_v15, %v872_v14 }
 0x231   :  { %1480 = vmatpush3.bf16.msra.mxu0 %v1479_v21  ;;  %1504 = vmatpush3.bf16.msra.mxu1 %v1503_v22 }
 0x232   :  { %1481 = vmatprep.subr.bf16.mxu0 %v1767_v0  ;;  %1505 = vmatprep.subr.bf16.mxu1 %v1767_v0 }
 0x235   :  { %1483 = vmatpush3.bf16.msra.mxu0 %v1482_v27  ;;  %1507 = vmatpush3.bf16.msra.mxu1 %v1506_v28 }
 0x236   :  { %1484 = vmatprep.subr.bf16.mxu0 %v1767_v0  ;;  %1508 = vmatprep.subr.bf16.mxu1 %v1767_v0 }
 0x239   :  { %1486 = vmatpush3.bf16.msra.mxu0 %v1485_v32  ;;  %1510 = vmatpush3.bf16.msra.mxu1 %v1509_v34  ;;  %v1009_v32 = vsel %vm761_vm6, 1.0, %v1769_v44  ;;  %v1011_v34 = vsel %vm770_vm7, 1.0, %v1769_v44 }
 0x23a   :  { %1343 = vmatprep.subr.mxu0 %v1769_v44  ;;  %1511 = vmatprep.subr.bf16.mxu1 %v1767_v0 }
 0x2ef   :  { %v435_v41 = vpop.f32.mrb[2].mxu0  ;;  %v521_v42 = vpop.f32.mrb[2].mxu1 }
 0x2f0   :  { %v436_v43 = vadd.f32 %v435_v41, %v367_v40  ;;  %v529_v45 = vmul.f32 %v521_v42, %v521_v42  ;;  %v1237_v46 = vpop.f32.mrb[3].mxu0  ;;  %v1272_v47 = vpop.f32.mrb[3].mxu1  ;;  %v1013_v40 = vsel %vm780_vm10, 1.0, %v1769_v44 }
 0x2f2   :  { %1306 = vmatmul.mubr.f32.vlgmr.msra.gmra.mrb[4].mxu0 %v436_v43  ;;  %1341 = vmatmul.mubr.f32.vlgmr.msra.gmra.mrb[4].mxu1 %v436_v43  ;;  %v530_v48 = vsel %vm162_vm0, %v529_v45, 0.0  ;;  %v525_v49 = vsel %vm162_vm0, %v436_v43, 0.0 }
 0x2f3   :  { %531 = vadd.xlane.f32.xlu1 %v530_v48  ;;  %526 = vadd.xlane.f32.xlu0 %v525_v49  ;;  %v874_v49 = vld [vmem:[#allocation14 + $0x30] sm:$0xff] }
 0x2f4   :  { %1345 = vmatprep.mubr.msk.f32.mxu0 %vm1768_vm1, %v1769_v44  ;;  %1364 = vmatprep.mubr.msk.f32.mxu1 %vm1768_vm1, %v1769_v44 }
 0x2f5   :  { %1344 = vmatpush3.msra.mxu0 %v785_v7  ;;  %1513 = vmatpush3.bf16.msra.mxu1 %v1512_v11  ;;  %v1018_v7 = vld [vmem:[%s2115_s14] ss:$0 sm:$0xff] }
 0x2f6   :  { %1514 = vmatprep.subr.bf16.mxu1 %v1767_v0 }
 0x2f9   :  { %1516 = vmatpush3.bf16.msra.mxu1 %v1515_v13 }
 0x2fa   :  { %1517 = vmatprep.subr.bf16.mxu1 %v1767_v0 }
 0x2fd   :  { %1519 = vmatpush3.bf16.msra.mxu1 %v1518_v16 }
 0x2fe   :  { %1520 = vmatprep.subr.bf16.mxu1 %v1767_v0 }
 0x380   :  { %v527_v50 = vpop.xlane.xlu0 %526  ;;  %v532_v17 = vpop.xlane.xlu1 %531 }
 0x381   :  { %v2050_v51 = vmul.f32 0.16666667, %v527_v50  ;;  %v533_v18 = vmul.f32 0.2, %v532_v17  ;;  %v875_v50 = vld [vmem:[#allocation14 + $0x38] sm:$0xff] }
 0x383   :  { %v542_v53 = vsub.f32 %v436_v43, %v2050_v51  ;;  %v534_v20 = vadd.f32 1e-06, %v533_v18  ;;  %v764_v36 = vmul.f32 %v1009_v32, %v2050_v51  ;;  %v1014_v51 = vld [vmem:[%s2112_s11] ss:$0 sm:$0xff] }
 0x385   :  { %v549_v54 = vmul.f32 %v547_v52, %v542_v53  ;;  %1541 = vrsqrt.f32 %v534_v20  ;;  %vm537_vm2 = vcmp.eq.f32.partialorder %v534_v20, inf  ;;  %v540_v28 = vand.u32 2147483648, %v534_v20 }
 0x386   :  { %vm539_vm5 = vcmp.eq.f32.partialorder %v534_v20, 0.0  ;;  %v1521_v52 = vpack.c.bf16 %v875_v50, %v874_v49 }
 0x387   :  { %v550_v55 = vmul.f32 %v549_v54, %v549_v54 }
 0x388   :  { %1522 = vmatpush3.bf16.msra.mxu1 %v1521_v52 }
 0x389   :  { %v551_v56 = vsel %vm162_vm0, %v550_v55, 0.0 }
 0x38a   :  { %552 = vadd.xlane.f32.xlu1 %v551_v56  ;;  %v1016_v56 = vld [vmem:[%s2114_s13] ss:$0 sm:$0xff] }
 0x38f   :  { %v1542_v22 = vpop.eup %1541 }
 0x390   :  { %v536_v24 = vmul.f32 %v1542_v22, %v534_v20 }
 0x392   :  { %v538_v27 = vsel %vm537_vm2, %v534_v20, %v536_v24 }
 0x393   :  { %v541_v29 = vsel %vm539_vm5, %v540_v28, %v538_v27 }
 0x394   :  { %v768_v35 = vmul.f32 %v1010_v30, %v541_v29 }
 0x396   :  { %v769_v39 = vadd.f32 %v768_v35, %v764_v36 }
 0x3c5   :  { %v644_v57 = vpop.f32.mrb[4].mxu0  ;;  %v730_v58 = vpop.f32.mrb[4].mxu1 }
 0x3c6   :  { %v734_v59 = vmul.f32 %v644_v57, %v644_v57  ;;  %v735_v60 = vmul.f32 %v730_v58, %v730_v58  ;;  %v1307_v61 = vpop.f32.mrb[5].mxu0  ;;  %v1342_v62 = vpop.f32.mrb[5].mxu1 }
 0x3c8   :  { %v736_v3 = vadd.f32 %v735_v60, %v734_v59 }
 0x3ca   :  { %v755_v4 = vmul.f32 %v1008_v63, %v736_v3  ;;  %v744_v5 = vmul.f32 %v1007_v2, %v736_v3 }
 0x3cc   :  { %v756_v1 = vsel %vm162_vm0, %v755_v4, 0.0  ;;  %v745_v6 = vsel %vm162_vm0, %v744_v5, 0.0 }
 0x3cd   :  { %757 = vadd.xlane.f32.xlu1 %v756_v1  ;;  %746 = vadd.xlane.f32.xlu0 %v745_v6 }
 0x417   :  { %v553_v19 = vpop.xlane.xlu1 %552 }
 0x418   :  { %v554_v21 = vmul.f32 0.2, %v553_v19 }
 0x41a   :  { %1543 = vrsqrt.f32 %v554_v21  ;;  %vm557_vm4 = vcmp.eq.f32.partialorder %v554_v21, inf  ;;  %v560_v31 = vand.u32 2147483648, %v554_v21  ;;  %vm559_vm8 = vcmp.eq.f32.partialorder %v554_v21, 0.0 }
 0x424   :  { %v1544_v23 = vpop.eup %1543 }
 0x425   :  { %v556_v26 = vmul.f32 %v1544_v23, %v554_v21 }
 0x427   :  { %v558_v0 = vsel %vm557_vm4, %v554_v21, %v556_v26 }
 0x428   :  { %v561_v33 = vsel %vm559_vm8, %v560_v31, %v558_v0 }
 0x429   :  { %v773_v37 = vmul.f32 %v1011_v34, %v561_v33 }
 0x42b   :  { %v774_v43 = vadd.f32 %v773_v37, %v769_v39 }
 0x45a   :  { %v758_v41 = vpop.xlane.xlu1 %757  ;;  %v747_v42 = vpop.xlane.xlu0 %746 }
 0x45b   :  { %v778_v45 = vmul.f32 %v1012_v38, %v747_v42  ;;  %v783_v46 = vmul.f32 %v1013_v40, %v758_v41 }
 0x45d   :  { %v779_v47 = vadd.f32 %v778_v45, %v774_v43 }
 0x45f   :  { %v784_v48 = vadd.f32 %v783_v46, %v779_v47 }
 0x461   :  { %1346 = vmatmul.mubr.msk.f32.vlgmr.msra.gmra.mrb[6].mxu0 %vm793_vm11, %v784_v48 }
 0x534   :  { %v863_v53 = vpop.f32.mrb[6].mxu0 }
 0x535   :  { %v864_v54 = vadd.f32 %v1014_v51, %v863_v53  ;;  %v1347_v44 = vpop.f32.mrb[7].mxu0 }
 0x537   :  { %v867_v55 = vmax.f32 %v864_v54, 0.0 }
 0x539   :  { %1365 = vmatmul.mubr.msk.f32.vlgmr.msra.gmra.mrb[6].mxu1 %vm883_vm12, %v867_v55 }
 0x60c   :  { %v953_v57 = vpop.f32.mrb[6].mxu1 }
 0x60d   :  { %v954_v58 = vadd.f32 %v1016_v56, %v953_v57  ;;  %v1366_v59 = vpop.f32.mrb[7].mxu1 }
 0x60f   :  { %v957_v60 = vsel %vm162_vm0, %v954_v58, 0.0 }
 0x610   :  { %958 = vadd.xlane.f32.xlu0 %v957_v60 }
 0x69d   :  { %v959_v61 = vpop.xlane.xlu0 %958 }
 0x69e   :  { %v961_v62 = vmul.f32 0.0078125, %v959_v61 }
 0x6a0   :  { %v962_v63 = vsub.f32 %v954_v58, %v961_v62 }
 0x6a2   :  { %v963_v2 = vmul.f32 %v962_v63, %v962_v63 }
 0x6a4   :  { %v964_v3 = vsel %vm162_vm0, %v963_v2, 0.0 }
 0x6a5   :  { %965 = vadd.xlane.f32.xlu1 %v964_v3 }
 0x732   :  { %v966_v4 = vpop.xlane.xlu1 %965 }
 0x733   :  { %v967_v5 = vmul.f32 0.0078125, %v966_v4 }
 0x735   :  { %v968_v1 = vadd.f32 1e-05, %v967_v5 }
 0x737   :  { %1545 = vrsqrt.f32 %v968_v1 }
 0x741   :  { %v1546_v6 = vpop.eup %1545 }
 0x742   :  { %v970_v8 = vmul.f32 %v1546_v6, %v962_v63 }
 0x744   :  { %v978_v10 = vmul.f32 %v1018_v7, %v970_v8 }
 0x746   :  { %v986_v11 = vadd.f32 %v1019_v9, %v978_v10 }
 0x748   :  { %987 = vst [vmem:[#allocation16] sm:$0x3] %v986_v11 }
 0x749   :  { %1734 = shalt.err (!%p1731_p12)
}
 0x74a   :  { %s2123_s1 = sld [smem:[#allocation24_spill]] }
 0x750   :  { %s1735_s18 = scalar_lea.hbm %s2123_s1, 32 }
 0x751   :  { %p1736_p13 = scmp.ne.s32.totalorder %s2123_s1, %s1735_s18  ;;  %p1739_p0 = scmp.lt.u32.totalorder %s1735_s18, %s2123_s1 }
 0x753   :  { %p1741_p1 = pnand %p1739_p0, %p1736_p13 }
 0x755   :  { %1744 = shalt.err (!%p1741_p1)
}
 0x756   :  { %997 = dma.vmem_to_hbm [thread:$0]  %s995_s3, 32, %s2123_s1, [#allocation4]  }
 0x757   :  { %1755 = dma.done.wait [#allocation4], 32  }
 0x758   :  { %1756 = vsyncadd [#allocation4], 4294967264 }
 0x759   :  { %1001 = vsyncpa [#allocation3], 1 }
 0x75a   :  { %1002 = vsyncpa [#allocation6], 1 }
 0x75b   :  { %1003 = vsyncpa [#allocation9], 1 }
 0x75c   :  { %1004 = vsyncpa [#allocation12], 1 }
 0x75d   :  { %1005 = vsyncpa [#allocation15], 1 }
 0x75e   :  { %1006 = vsyncpa [#allocation4], 1 }

</bundles_post_ra>
